<compile_context>
chip_gen: v6e
topology: v6e:2x2x1
jax: 0.10.0
libtpu: 0.0.40
codegen_flags: <defaults>
</compile_context>

<pallas_src>
import functools

import jax
import jax.numpy as jnp
from jax import lax
from jax.experimental import pallas as pl
from jax.experimental.pallas import tpu as pltpu

LANES = 128
_MIN_KERNEL_ELEMS = 8 * LANES   # below this, plain JAX beats a kernel launch


@functools.lru_cache(maxsize=None)
def _chip_config():
    """Per-chip tiling knobs: (num_core_shards, max rows per grid step)."""
    kind = ""
    try:
        kind = jax.devices()[0].device_kind.lower()
    except Exception:
        pass
    if "v7" in kind:
        # 2 TensorCores/chip, ~3.2 TB/s HBM: large tiles (4 MiB/input/step,
        # 16 MiB double-buffered) keep the kernel bandwidth- not overhead-bound.
        return 2, 8192
    if "v6" in kind:
        return 1, 4096   # 2 MiB/input tile; 8 MiB buffered << 32 MiB scoped VMEM
    if "v5" in kind:
        return 1, 4096   # 8 MiB buffered fits v5e's 16 MiB scoped default
    return 1, 2048       # unknown chip: conservative


def _algebraic_loss_kernel(yt_ref, yp_ref, *out_refs, tm, valid_rows,
                           steps_per_core, n_blocks, need_mask, with_count,
                           ncores):
    sum_ref = out_refs[0]
    cnt_ref = out_refs[1] if with_count else None

    if ncores > 1:
        c = pl.program_id(0)        # parallel (core) axis
        i = pl.program_id(1)        # arbitrary (reduction) axis
    else:
        c = 0
        i = pl.program_id(0)

    # Output blocks are resident across the reduction axis (same block index
    # for every i) -> initialize once per core, accumulate every step.
    @pl.when(i == 0)
    def _():
        sum_ref[...] = jnp.zeros_like(sum_ref)
        if with_count:
            cnt_ref[...] = jnp.zeros_like(cnt_ref)

    yt = yt_ref[...].astype(jnp.float32)
    yp = yp_ref[...].astype(jnp.float32)
    e = yt - yp
    e2 = e * e
    loss = e2 * lax.rsqrt(1.0 + e2)          # e2 / sqrt(1+e2): one EUP rsqrt
    nz = (yp != 0.0).astype(jnp.float32) if with_count else None

    blk = c * steps_per_core + i             # logical (unclamped) block index

    def _accumulate(loss_v, nz_v):
        # Lane-dense partial accumulation (VPU adds + one sublane reduce).
        sum_ref[...] += jnp.sum(loss_v, axis=0, keepdims=True)
        if with_count:
            cnt_ref[...] += jnp.sum(nz_v, axis=0, keepdims=True)

    if not need_mask:
        _accumulate(loss, nz)
    else:
        last = n_blocks - 1

        @pl.when(blk < last)
        def _():
            # Interior blocks (vast majority): unmasked fast path, no iota.
            _accumulate(loss, nz)

        @pl.when(blk >= last)
        def _():
            # Boundary block (rows past the real array) and clamped duplicate
            # blocks on the 2-core grid (blk >= n_blocks) contribute nothing.
            row_ids = blk * tm + lax.broadcasted_iota(jnp.int32, (tm, LANES), 0)
            keep = row_ids < valid_rows
            _accumulate(jnp.where(keep, loss, 0.0),
                        jnp.where(keep, nz, 0.0) if with_count else None)


def _reduce_sums(y_t2d, y_p2d, *, with_count, max_tm_override=None):
    rows = y_t2d.shape[0]
    ncores, max_tm = _chip_config()
    if max_tm_override is not None:
        max_tm = max_tm_override

    # Largest multiple-of-8 row tile that neither exceeds the per-chip cap
    # nor the array itself (so the sublane block dim never exceeds rows).
    tm = min(max_tm, max(8, (rows // 8) * 8))
    n_blocks = -(-rows // tm)
    grid_cores = ncores if n_blocks > 1 else 1
    steps_per_core = -(-n_blocks // grid_cores)
    need_mask = (grid_cores * steps_per_core * tm != rows)

    if grid_cores > 1:
        def in_map(c, i):
            blk = c * steps_per_core + i
            # Clamp fully out-of-range logical blocks; their contribution is
            # zeroed by the in-kernel row mask.
            return (jnp.minimum(blk, n_blocks - 1), 0)
        out_map = lambda c, i: (c, 0, 0)
        grid = (grid_cores, steps_per_core)
        dims = ("parallel", "arbitrary")
        # TODO(synk): if an xprof trace on v7x shows only one TensorCore
        # active, switch the core axis to pltpu.CORE_PARALLEL.
    else:
        in_map = lambda i: (i, 0)
        out_map = lambda i: (0, 0, 0)
        grid = (steps_per_core,)
        dims = ("arbitrary",)

    kernel = functools.partial(
        _algebraic_loss_kernel,
        tm=tm, valid_rows=rows, steps_per_core=steps_per_core,
        n_blocks=n_blocks, need_mask=need_mask, with_count=with_count,
        ncores=grid_cores)

    out_shape = [jax.ShapeDtypeStruct((grid_cores, 1, LANES), jnp.float32)]
    out_specs = [pl.BlockSpec((None, 1, LANES), out_map)]
    if with_count:
        out_shape.append(jax.ShapeDtypeStruct((grid_cores, 1, LANES), jnp.float32))
        out_specs.append(pl.BlockSpec((None, 1, LANES), out_map))

    # Only raise the scoped VMEM limit when the big tiles actually need it
    # (2 inputs x 2 pipeline buffers); defaults cover the common cases.
    tile_bytes = tm * LANES * y_t2d.dtype.itemsize
    need_bytes = 4 * tile_bytes + (2 << 20)
    compiler_kwargs = dict(dimension_semantics=dims)
    if need_bytes > (12 << 20):
        compiler_kwargs["vmem_limit_bytes"] = int(min(need_bytes + (12 << 20),
                                                      40 << 20))

    outs = pl.pallas_call(
        kernel,
        out_shape=tuple(out_shape),
        grid_spec=pltpu.PrefetchScalarGridSpec(
            num_scalar_prefetch=0,
            grid=grid,
            in_specs=[
                pl.BlockSpec((tm, LANES), in_map),
                pl.BlockSpec((tm, LANES), in_map),
            ],
            out_specs=out_specs,
        ),
        compiler_params=pltpu.CompilerParams(**compiler_kwargs),
    )(y_t2d, y_p2d)

    # Single final cross-lane reduce (tiny) done by XLA.
    loss_sum = jnp.sum(outs[0])
    nz_cnt = jnp.sum(outs[1]) if with_count else None
    return loss_sum, nz_cnt


def _tail_sums(t_flat, p_flat, with_count):
    t = t_flat.astype(jnp.float32)
    p = p_flat.astype(jnp.float32)
    e = t - p
    e2 = e * e
    s = jnp.sum(e2 * lax.rsqrt(1.0 + e2))
    c = jnp.sum((p != 0.0).astype(jnp.float32)) if with_count else None
    return s, c


def algebraic_loss(y_t, y_prime_t, exclude_zeros=False, *, max_tm=None):
    """Pallas implementation of AlgebraicLoss.forward. Returns an f32 scalar."""
    assert y_t.shape == y_prime_t.shape
    n = y_t.size
    flat_t = jnp.ravel(y_t)
    flat_p = jnp.ravel(y_prime_t)

    tail = n % LANES
    n_main = n - tail
    use_kernel = n_main >= _MIN_KERNEL_ELEMS

    loss_sum = jnp.float32(0.0)
    nz_cnt = jnp.float32(0.0)

    if use_kernel:
        if tail:
            # Ragged size: run the 128-aligned bulk through the kernel (no
            # padded full-array copy is ever written); the <128-element tail
            # is handled below in plain JAX.
            t2 = flat_t[:n_main].reshape(n_main // LANES, LANES)
            p2 = flat_p[:n_main].reshape(n_main // LANES, LANES)
        else:
            t2 = flat_t.reshape(-1, LANES)
            p2 = flat_p.reshape(-1, LANES)
        s, c = _reduce_sums(t2, p2, with_count=exclude_zeros,
                            max_tm_override=max_tm)
        loss_sum = loss_sum + s
        if exclude_zeros:
            nz_cnt = nz_cnt + c

    rem_start = n_main if use_kernel else 0
    if rem_start < n:
        s, c = _tail_sums(flat_t[rem_start:], flat_p[rem_start:], exclude_zeros)
        loss_sum = loss_sum + s
        if exclude_zeros:
            nz_cnt = nz_cnt + c

    if exclude_zeros:
        # Matches torch: all-zero y_prime_t divides by zero -> inf/nan.
        return loss_sum / nz_cnt
    return loss_sum / jnp.float32(n)


def _reference(y_t, y_prime_t, exclude_zeros=False):
    e = y_t.astype(jnp.float32) - y_prime_t.astype(jnp.float32)
    loss = e * e / jnp.sqrt(1.0 + e * e)
    if exclude_zeros:
        return jnp.sum(loss) / jnp.count_nonzero(y_prime_t).astype(jnp.float32)
    return jnp.mean(loss)


def _check(shape, key, max_tm=None):
    k1, k2 = jax.random.split(key)
    y_t = jax.random.normal(k1, shape, dtype=jnp.float32)
    y_p = jax.random.normal(k2, shape, dtype=jnp.float32)
    y_p = jnp.where(y_p > 0.5, 0.0, y_p)   # inject zeros for exclude_zeros

    out_mean = jax.block_until_ready(algebraic_loss(y_t, y_p, False, max_tm=max_tm))
    out_excl = jax.block_until_ready(algebraic_loss(y_t, y_p, True, max_tm=max_tm))
    ref_mean = _reference(y_t, y_p, False)
    ref_excl = _reference(y_t, y_p, True)
    assert jnp.allclose(out_mean, ref_mean, rtol=2e-5, atol=1e-6), (
        shape, out_mean, ref_mean)
    assert jnp.allclose(out_excl, ref_excl, rtol=2e-5, atol=1e-6), (
        shape, out_excl, ref_excl)


if __name__ == "__main__":
    key = jax.random.PRNGKey(0)
    k0, k1, k2, k3 = jax.random.split(key, 4)

    # Primary small NCHW case (batch=2, channels=4, spatial=16): 128-aligned,
    # single-block kernel path, no padding or extra copies.
    _check((2, 4, 16, 16), k0)
    # Ragged size: aligned bulk through the kernel (boundary row mask branch)
    # plus a <128-element tail handled in plain JAX.
    _check((3, 5, 7, 11), k1)
    # Multi-block case with a forced small row tile: exercises accumulation
    # across grid steps, odd block count (index clamping on 2-core chips) and
    # the gated boundary mask.
    _check((2, 4, 56, 128), k2, max_tm=64)
    # Tiny input: pure-JAX fallback path.
    _check((2, 3), k3)

    print("KERNEL_OK")
</pallas_src>

<mosaic_0001>
module attributes {stable_mosaic.version = 11 : i64} {
  func.func @_algebraic_loss_kernel(%arg0: i32, %arg1: memref<16x128xf32, #tpu.memory_space<vmem>>, %arg2: memref<16x128xf32, #tpu.memory_space<vmem>>, %arg3: memref<1x1x128xf32, #tpu.memory_space<vmem>>) attributes {dimension_semantics = [#tpu.dimension_semantics<arbitrary>], iteration_bounds = array<i64: 1>, scalar_prefetch = 0 : i64, scratch_operands = 0 : i64, tpu.core_type = #tpu.core_type<tc>, window_params = [{transform_indices = @transform_0, window_bounds = array<i64: 16, 128>}, {transform_indices = @transform_1, window_bounds = array<i64: 16, 128>}, {pipeline_mode = #tpu.pipeline_mode<synchronous>, transform_indices = @transform_2, window_bounds = array<i64: 1, 1, 128>}]} {
    %c0_i32 = arith.constant 0 : i32
    %0 = arith.cmpi eq, %arg0, %c0_i32 : i32
    %1 = arith.extui %0 : i1 to i32
    %c0_i32_0 = arith.constant 0 : i32
    %2 = arith.cmpi ne, %1, %c0_i32_0 : i32
    scf.if %2 {
      %cst_11 = arith.constant 0.000000e+00 : f32
      %19 = vector.broadcast %cst_11 : f32 to vector<1x128xf32>
      %c0_12 = arith.constant 0 : index
      %c0_13 = arith.constant 0 : index
      %c0_14 = arith.constant 0 : index
      %20 = vector.load %arg3[%c0_12, %c0_13, %c0_14] : memref<1x1x128xf32, #tpu.memory_space<vmem>>, vector<1x1x128xf32>
      %21 = vector.shape_cast %20 : vector<1x1x128xf32> to vector<1x128xf32>
      %22 = vector.shape_cast %19 : vector<1x128xf32> to vector<1x1x128xf32>
      tpu.vector_store %arg3[%c0_12, %c0_13, %c0_14], %22 {strides = array<i32>} : memref<1x1x128xf32, #tpu.memory_space<vmem>>, vector<1x1x128xf32>,
    } else {
    }
    %c0 = arith.constant 0 : index
    %c0_1 = arith.constant 0 : index
    %3 = vector.load %arg1[%c0, %c0_1] : memref<16x128xf32, #tpu.memory_space<vmem>>, vector<16x128xf32>
    %c0_2 = arith.constant 0 : index
    %c0_3 = arith.constant 0 : index
    %4 = vector.load %arg2[%c0_2, %c0_3] : memref<16x128xf32, #tpu.memory_space<vmem>>, vector<16x128xf32>
    %5 = arith.subf %3, %4 : vector<16x128xf32>
    %6 = arith.mulf %5, %5 : vector<16x128xf32>
    %cst = arith.constant 1.000000e+00 : f32
    %7 = vector.broadcast %cst : f32 to vector<16x128xf32>
    %8 = arith.addf %7, %6 : vector<16x128xf32>
    %9 = math.rsqrt %8 : vector<16x128xf32>
    %10 = arith.mulf %6, %9 : vector<16x128xf32>
    %c0_4 = arith.constant 0 : index
    %c0_5 = arith.constant 0 : index
    %c0_6 = arith.constant 0 : index
    %11 = vector.load %arg3[%c0_4, %c0_5, %c0_6] : memref<1x1x128xf32, #tpu.memory_space<vmem>>, vector<1x1x128xf32>
    %12 = vector.shape_cast %11 : vector<1x1x128xf32> to vector<1x128xf32>
    %cst_7 = arith.constant dense<0.000000e+00> : vector<128xf32>
    %13 = vector.multi_reduction <add>, %10, %cst_7 [0] : vector<16x128xf32> to vector<128xf32>
    %14 = vector.shape_cast %13 : vector<128xf32> to vector<1x128xf32>
    %15 = arith.addf %12, %14 : vector<1x128xf32>
    %c0_8 = arith.constant 0 : index
    %c0_9 = arith.constant 0 : index
    %c0_10 = arith.constant 0 : index
    %16 = vector.load %arg3[%c0_8, %c0_9, %c0_10] : memref<1x1x128xf32, #tpu.memory_space<vmem>>, vector<1x1x128xf32>
    %17 = vector.shape_cast %16 : vector<1x1x128xf32> to vector<1x128xf32>
    %18 = vector.shape_cast %15 : vector<1x128xf32> to vector<1x1x128xf32>
    tpu.vector_store %arg3[%c0_8, %c0_9, %c0_10], %18 {strides = array<i32>} : memref<1x1x128xf32, #tpu.memory_space<vmem>>, vector<1x1x128xf32>,
    return
  }
  func.func @transform_0(%arg0: i32) -> (i32, i32) {
    %c0_i32 = arith.constant 0 : i32
    %c0_i32_0 = arith.constant 0 : i32
    return %arg0, %c0_i32 : i32, i32
  }
  func.func @transform_1(%arg0: i32) -> (i32, i32) {
    %c0_i32 = arith.constant 0 : i32
    %c0_i32_0 = arith.constant 0 : i32
    return %arg0, %c0_i32 : i32, i32
  }
  func.func @transform_2(%arg0: i32) -> (i32, i32, i32) {
    %c0_i32 = arith.constant 0 : i32
    %c0_i32_0 = arith.constant 0 : i32
    %c0_i32_1 = arith.constant 0 : i32
    %c0_i32_2 = arith.constant 0 : i32
    return %c0_i32, %c0_i32_0, %c0_i32_1 : i32, i32, i32
  }
}

</mosaic_0001>

<bundles_post_ra>
// kernel: tpu_custom_call.1
= control target key start
LH: loop header
LB: loop body
LE: loop exit
PB: predicated region body
PF: predicated region fallthrough
CT: control target
= control target key end

     0   :  { %7 = vsyncpa [#allocation3], 0  ;;  %s191_s0 = inlined_call_operand.hbm [shape: f32[16,128], index: 0, kind: input, shape index: {}]   ;;  %s192_s1 = inlined_call_operand.hbm [shape: f32[16,128], index: 1, kind: input, shape index: {}]   ;;  %s193_s2 = inlined_call_operand.hbm [shape: f32[1,1,128], index: 2, kind: output, shape index: {}]  }
   0x1   :  { %8 = vsyncpa [#allocation6], 0 }
   0x2   :  { %9 = vsyncpa [#allocation4], 0  ;;  %s161_s9 = smov [#allocation2]  }
   0x3   :  { %s15_s10 = sshll.u32 %s161_s9, 4  ;;  %s16_s10 = int_to_ptr.vmem [resolvable:$true] %s15_s10 }
   0x4   :  { %s103_s11 = scalar_lea.vmem %s16_s10, 256  ;;  %p108_p1 = scmp.lt.s32.totalorder %s16_s10, %s16_s10 }
   0x5   :  { %p104_p0 = scmp.ne.s32.totalorder %s16_s10, %s103_s11  ;;  %p109_p2 = scmp.lt.s32.totalorder %s103_s11, %s103_s11 }
   0x7   :  { %p110_p3 = por %p109_p2, %p108_p1 }
   0x9   :  { %p111_p4 = pnand %p110_p3, %p104_p0 }
   0xb   :  { %114 = shalt.err (!%p111_p4)
}
   0xc   :  { %s162_s12 = smov 128   ;;  %s163_s13 = smov 8  }
   0xd   :  { %21 = dma.hbm_to_vmem [thread:$0]  %s191_s0, 256, %s16_s10, [#allocation3], %s162_s12, %s162_s12, %s163_s13  }
   0xe   :  { %s164_s16 = smov [#allocation5]  }
   0xf   :  { %s27_s17 = sshll.u32 %s164_s16, 4  ;;  %s28_s17 = int_to_ptr.vmem [resolvable:$true] %s27_s17 }
  0x10   :  { %s123_s18 = scalar_lea.vmem %s28_s17, 256  ;;  %p128_p6 = scmp.lt.s32.totalorder %s28_s17, %s28_s17 }
  0x11   :  { %p124_p5 = scmp.ne.s32.totalorder %s28_s17, %s123_s18  ;;  %p129_p7 = scmp.lt.s32.totalorder %s123_s18, %s123_s18 }
  0x13   :  { %p130_p8 = por %p129_p7, %p128_p6 }
  0x15   :  { %p131_p9 = pnand %p130_p8, %p124_p5 }
  0x17   :  { %134 = shalt.err (!%p131_p9)
}
  0x18   :  { %33 = dma.hbm_to_vmem [thread:$0]  %s192_s1, 256, %s28_s17, [#allocation6], %s162_s12, %s162_s12, %s163_s13  }
  0x19   :  { %155 = dma.done.wait [#allocation3], 256  }
  0x1a   :  { %156 = vsyncadd [#allocation3], 4294967040 }
  0x1b   :  { %157 = dma.done.wait [#allocation6], 256  }
  0x1c   :  { %158 = vsyncadd [#allocation6], 4294967040  ;;  %v165_v0 = vmov 0.0   ;;  %v45_v1 = vld [vmem:[#allocation2] sm:$0xff]  ;;  %v46_v2 = vld [vmem:[#allocation2 + $0x8] sm:$0xff]  ;;  %s166_s0 = smov [#allocation7]  }
  0x1d   :  { %44 = vst [vmem:[#allocation7] sm:$0x1] %v165_v0  ;;  %v47_v3 = vld [vmem:[#allocation5] sm:$0xff]  ;;  %v48_v4 = vld [vmem:[#allocation5 + $0x8] sm:$0xff]  ;;  %s75_s1 = sshll.u32 %s166_s0, 4  ;;  %s76_s1 = int_to_ptr.vmem [resolvable:$true] %s75_s1 }
  0x1e   :  { %v49_v5 = vsub.f32 %v45_v1, %v47_v3  ;;  %v50_v6 = vsub.f32 %v46_v2, %v48_v4  ;;  %s135_s21 = scalar_lea.vmem %s76_s1, 16  ;;  %s139_s22 = scalar_lea.vmem %s76_s1, 32 }
  0x1f   :  { %p136_p10 = scmp.ne.s32.totalorder %s76_s1, %s135_s21  ;;  %p140_p11 = scmp.lt.s32.totalorder %s76_s1, %s76_s1 }
  0x20   :  { %v51_v7 = vmul.f32 %v49_v5, %v49_v5  ;;  %v52_v8 = vmul.f32 %v50_v6, %v50_v6  ;;  %p141_p12 = scmp.lt.s32.totalorder %s139_s22, %s135_s21 }
  0x22   :  { %v53_v9 = vadd.f32 1.0, %v51_v7  ;;  %v54_v10 = vadd.f32 1.0, %v52_v8  ;;  %p142_p13 = por %p141_p12, %p140_p11 }
  0x24   :  { %91 = vrsqrt.f32 %v53_v9  ;;  %v59_v21 = vld [vmem:[#allocation7] sm:$0x1]  ;;  %p143_p0 = pnand %p142_p13, %p136_p10 }
  0x25   :  { %93 = vrsqrt.f32 %v54_v10 }
  0x31   :  { %v92_v11 = vpop.eup %91 }
  0x32   :  { %v94_v12 = vpop.eup %93  ;;  %v57_v13 = vmul.f32 %v92_v11, %v51_v7 }
  0x33   :  { %v58_v14 = vmul.f32 %v94_v12, %v52_v8 }
  0x35   :  { %v60_v15 = vadd.f32 %v58_v14, %v57_v13 }
  0x37   :  { %v61_v16 = vrot.slane %v60_v15, 4 }
  0x39   :  { %v62_v17 = vadd.f32 %v61_v16, %v60_v15 }
  0x3b   :  { %v63_v18 = vrot.slane %v62_v17, 2 }
  0x3d   :  { %v64_v19 = vadd.f32 %v63_v18, %v62_v17 }
  0x3f   :  { %v65_v20 = vrot.slane %v64_v19, 1 }
  0x41   :  { %v66_v22 = vadd.f32 %v65_v20, %v64_v19 }
  0x43   :  { %v67_v23 = vadd.f32 %v66_v22, %v59_v21 }
  0x45   :  { %68 = vst [vmem:[#allocation7] sm:$0x1] %v67_v23 }
  0x46   :  { %146 = shalt.err (!%p143_p0)
}
  0x47   :  { %78 = dma.vmem_to_hbm [thread:$0]  %s76_s1, 16, %s193_s2, [#allocation4]  }
  0x48   :  { %159 = dma.done.wait [#allocation4], 16  }
  0x49   :  { %160 = vsyncadd [#allocation4], 4294967280 }
  0x4a   :  { %82 = vsyncpa [#allocation3], 1 }
  0x4b   :  { %83 = vsyncpa [#allocation6], 1 }
  0x4c   :  { %84 = vsyncpa [#allocation4], 1 }

</bundles_post_ra>
